<compile_context>
chip_gen: v6e
topology: v6e:2x2x1
jax: 0.10.0
libtpu: 0.0.40
codegen_flags: <defaults>
</compile_context>

<pallas_src>
import functools

import jax
import jax.numpy as jnp
from jax.experimental import pallas as pl
from jax.experimental.pallas import tpu as pltpu

LOG_STD_MIN = -10.0
LOG_STD_MAX = 2.0


def _round_up(x: int, m: int) -> int:
    return ((x + m - 1) // m) * m


# ----------------------------------------------------------------------------
# Kernel
# ----------------------------------------------------------------------------
def safe_actor_kernel(state_ref, eps_ref,
                      w1_ref, b1_ref, w2_ref, b2_ref, wh_ref, bh_ref,
                      wd1s_ref, wd1z_ref, bd1_ref, wd2_ref, bd2_ref,
                      wd3_ref, bd3_ref,
                      out_ref,
                      *, latent_pad, max_latent_action, max_action, compute_dtype):
    x = state_ref[...]
    xc = x.astype(compute_dtype)

    # ---- SafetyEncoder: Linear -> ReLU -> Linear -> ReLU, fused mean/log_std head ----
    h = jnp.dot(xc, w1_ref[...], preferred_element_type=jnp.float32) + b1_ref[...]
    h = jnp.maximum(h, 0.0)
    h = jnp.dot(h.astype(compute_dtype), w2_ref[...],
                preferred_element_type=jnp.float32) + b2_ref[...]
    h = jnp.maximum(h, 0.0)

    heads = jnp.dot(h.astype(compute_dtype), wh_ref[...],
                    preferred_element_type=jnp.float32) + bh_ref[...]
    mean = heads[:, :latent_pad]
    log_std = jnp.clip(heads[:, latent_pad:], LOG_STD_MIN, LOG_STD_MAX)
    std = jnp.exp(log_std)

    # ---- reparameterized sample + tanh squash (sample_grad; log_prob unused) ----
    z = mean + std * eps_ref[...]
    latent_action = jnp.tanh(z) * max_latent_action

    # ---- VAE decoder: relu(d1(cat(state, z))) -> relu(d2) -> act_lim * tanh(d3) ----
    a = (jnp.dot(xc, wd1s_ref[...], preferred_element_type=jnp.float32)
         + jnp.dot(latent_action.astype(compute_dtype), wd1z_ref[...],
                   preferred_element_type=jnp.float32)
         + bd1_ref[...])
    a = jnp.maximum(a, 0.0)
    a = jnp.dot(a.astype(compute_dtype), wd2_ref[...],
                preferred_element_type=jnp.float32) + bd2_ref[...]
    a = jnp.maximum(a, 0.0)
    a = jnp.dot(a.astype(compute_dtype), wd3_ref[...],
                preferred_element_type=jnp.float32) + bd3_ref[...]

    out_ref[...] = (max_action * jnp.tanh(a)).astype(out_ref.dtype)


# ----------------------------------------------------------------------------
# Parameter packing (zero-pad to 128-lane tiles, fuse heads, split decoder d1)
# ----------------------------------------------------------------------------
def _pad2(x, rows, cols, dtype):
    out = jnp.zeros((rows, cols), dtype)
    return out.at[:x.shape[0], :x.shape[1]].set(x.astype(dtype))


def _pack_params(p, state_dim, latent_dim, Sp, Hp, Lp, Ap, compute_dtype):
    hidden_dim = p["w1"].shape[1]

    w1 = _pad2(p["w1"], Sp, Hp, compute_dtype)
    b1 = _pad2(p["b1"], 1, Hp, jnp.float32)
    w2 = _pad2(p["w2"], Hp, Hp, compute_dtype)
    b2 = _pad2(p["b2"], 1, Hp, jnp.float32)

    # fused mean/log_std head: columns [0, Lp) = mean, [Lp, 2*Lp) = log_std
    wh = jnp.zeros((Hp, 2 * Lp), compute_dtype)
    wh = wh.at[:hidden_dim, :latent_dim].set(p["wm"].astype(compute_dtype))
    wh = wh.at[:hidden_dim, Lp:Lp + latent_dim].set(p["ws"].astype(compute_dtype))
    bh = jnp.zeros((1, 2 * Lp), jnp.float32)
    bh = bh.at[:, :latent_dim].set(p["bm"].astype(jnp.float32))
    bh = bh.at[:, Lp:Lp + latent_dim].set(p["bs"].astype(jnp.float32))

    # decoder d1: split the (state_dim + latent_dim, hidden) weight -> no in-kernel concat
    wd1s = _pad2(p["wd1"][:state_dim, :], Sp, Hp, compute_dtype)
    wd1z = _pad2(p["wd1"][state_dim:, :], Lp, Hp, compute_dtype)
    bd1 = _pad2(p["bd1"], 1, Hp, jnp.float32)
    wd2 = _pad2(p["wd2"], Hp, Hp, compute_dtype)
    bd2 = _pad2(p["bd2"], 1, Hp, jnp.float32)
    wd3 = _pad2(p["wd3"], Hp, Ap, compute_dtype)
    bd3 = _pad2(p["bd3"], 1, Ap, jnp.float32)

    return (w1, b1, w2, b2, wh, bh, wd1s, wd1z, bd1, wd2, bd2, wd3, bd3)


# ----------------------------------------------------------------------------
# Wrapper
# ----------------------------------------------------------------------------
def safe_actor_forward(state, eps, params, *,
                       max_latent_action=0.25, max_action=1.0,
                       compute_dtype=jnp.float32, tile_m=512):
    """SafeActor.forward(state) -> decoded_action. `eps` is the N(0,1) noise for rsample."""
    B, state_dim = state.shape
    hidden_dim = params["w1"].shape[1]
    latent_dim = params["wm"].shape[1]
    action_dim = params["wd3"].shape[1]

    # pad feature dims to lane-dense (multiples of 128); batch to the tile size
    Sp = _round_up(state_dim, 128)
    Hp = _round_up(hidden_dim, 128)
    Lp = _round_up(latent_dim, 128)
    Ap = _round_up(action_dim, 128)

    tm = min(_round_up(tile_m, 8), _round_up(B, 8))
    Bp = _round_up(B, tm)
    grid = (Bp // tm,)

    state_p = jnp.zeros((Bp, Sp), jnp.float32).at[:B, :state_dim].set(
        state.astype(jnp.float32))
    eps_p = jnp.zeros((Bp, Lp), jnp.float32).at[:B, :latent_dim].set(
        eps.astype(jnp.float32))

    packed = _pack_params(params, state_dim, latent_dim, Sp, Hp, Lp, Ap, compute_dtype)

    row = lambda i: (i, 0)       # batch-tiled arrays
    full = lambda i: (0, 0)      # weights / biases: same block every step (VMEM-resident)

    weight_specs = [
        pl.BlockSpec((Sp, Hp), full), pl.BlockSpec((1, Hp), full),          # w1, b1
        pl.BlockSpec((Hp, Hp), full), pl.BlockSpec((1, Hp), full),          # w2, b2
        pl.BlockSpec((Hp, 2 * Lp), full), pl.BlockSpec((1, 2 * Lp), full),  # wh, bh
        pl.BlockSpec((Sp, Hp), full), pl.BlockSpec((Lp, Hp), full),         # wd1s, wd1z
        pl.BlockSpec((1, Hp), full),                                        # bd1
        pl.BlockSpec((Hp, Hp), full), pl.BlockSpec((1, Hp), full),          # wd2, bd2
        pl.BlockSpec((Hp, Ap), full), pl.BlockSpec((1, Ap), full),          # wd3, bd3
    ]

    kernel = functools.partial(
        safe_actor_kernel,
        latent_pad=Lp,
        max_latent_action=float(max_latent_action),
        max_action=float(max_action),
        compute_dtype=compute_dtype,
    )

    out_p = pl.pallas_call(
        kernel,
        out_shape=jax.ShapeDtypeStruct((Bp, Ap), jnp.float32),
        grid_spec=pltpu.PrefetchScalarGridSpec(
            num_scalar_prefetch=0,
            grid=grid,
            in_specs=[pl.BlockSpec((tm, Sp), row),
                      pl.BlockSpec((tm, Lp), row)] + weight_specs,
            out_specs=pl.BlockSpec((tm, Ap), row),
        ),
        compiler_params=pltpu.CompilerParams(
            dimension_semantics=("parallel",)),
    )(state_p, eps_p, *packed)

    return out_p[:B, :action_dim]


# ----------------------------------------------------------------------------
# Init (PyTorch-style Linear init, weights stored transposed (in, out)) + reference
# ----------------------------------------------------------------------------
def init_params(key, state_dim, action_dim, hidden_dim, latent_dim):
    def linear(k, fan_in, fan_out):
        kw, kb = jax.random.split(k)
        bound = 1.0 / jnp.sqrt(fan_in)
        w = jax.random.uniform(kw, (fan_in, fan_out), jnp.float32, -bound, bound)
        b = jax.random.uniform(kb, (1, fan_out), jnp.float32, -bound, bound)
        return w, b

    ks = jax.random.split(key, 7)
    w1, b1 = linear(ks[0], state_dim, hidden_dim)
    w2, b2 = linear(ks[1], hidden_dim, hidden_dim)
    wm, bm = linear(ks[2], hidden_dim, latent_dim)
    ws, bs = linear(ks[3], hidden_dim, latent_dim)
    wd1, bd1 = linear(ks[4], state_dim + latent_dim, hidden_dim)
    wd2, bd2 = linear(ks[5], hidden_dim, hidden_dim)
    wd3, bd3 = linear(ks[6], hidden_dim, action_dim)
    return dict(w1=w1, b1=b1, w2=w2, b2=b2, wm=wm, bm=bm, ws=ws, bs=bs,
                wd1=wd1, bd1=bd1, wd2=wd2, bd2=bd2, wd3=wd3, bd3=bd3)


def reference_forward(state, eps, params, max_latent_action=0.25, max_action=1.0):
    p = params
    h = jnp.maximum(state @ p["w1"] + p["b1"], 0.0)
    h = jnp.maximum(h @ p["w2"] + p["b2"], 0.0)
    mean = h @ p["wm"] + p["bm"]
    log_std = jnp.clip(h @ p["ws"] + p["bs"], LOG_STD_MIN, LOG_STD_MAX)
    z = mean + jnp.exp(log_std) * eps
    latent_action = jnp.tanh(z) * max_latent_action
    d_in = jnp.concatenate([state, latent_action], axis=1)
    a = jnp.maximum(d_in @ p["wd1"] + p["bd1"], 0.0)
    a = jnp.maximum(a @ p["wd2"] + p["bd2"], 0.0)
    return max_action * jnp.tanh(a @ p["wd3"] + p["bd3"])


if __name__ == "__main__":
    # small shapes consistent with the module signature
    batch = 16
    state_dim = 16
    action_dim = 8
    hidden_dim = 32
    latent_dim = 8

    key = jax.random.PRNGKey(0)
    k_params, k_state, k_eps = jax.random.split(key, 3)
    params = init_params(k_params, state_dim, action_dim, hidden_dim, latent_dim)
    state = jax.random.normal(k_state, (batch, state_dim), jnp.float32)
    eps = jax.random.normal(k_eps, (batch, latent_dim), jnp.float32)

    ref = reference_forward(state, eps, params)

    # f32 matmul path (matches PyTorch reference closely)
    out_f32 = safe_actor_forward(state, eps, params, compute_dtype=jnp.float32)
    jax.block_until_ready(out_f32)
    assert out_f32.shape == (batch, action_dim)
    assert jnp.allclose(out_f32, ref, atol=1e-4, rtol=1e-4)

    # bf16 matmul inputs, f32 accumulation (v6e / v7x fast path) — looser tolerance
    out_bf16 = safe_actor_forward(state, eps, params, compute_dtype=jnp.bfloat16)
    jax.block_until_ready(out_bf16)
    assert jnp.allclose(out_bf16, ref, atol=5e-2, rtol=5e-2)

    print("KERNEL_OK")
</pallas_src>

<mosaic_0001>
module attributes {stable_mosaic.version = 11 : i64} {
  func.func @safe_actor_kernel(%arg0: i32, %arg1: memref<16x128xf32, #tpu.memory_space<vmem>>, %arg2: memref<16x128xf32, #tpu.memory_space<vmem>>, %arg3: memref<128x128xf32, #tpu.memory_space<vmem>>, %arg4: memref<1x128xf32, #tpu.memory_space<vmem>>, %arg5: memref<128x128xf32, #tpu.memory_space<vmem>>, %arg6: memref<1x128xf32, #tpu.memory_space<vmem>>, %arg7: memref<128x256xf32, #tpu.memory_space<vmem>>, %arg8: memref<1x256xf32, #tpu.memory_space<vmem>>, %arg9: memref<128x128xf32, #tpu.memory_space<vmem>>, %arg10: memref<128x128xf32, #tpu.memory_space<vmem>>, %arg11: memref<1x128xf32, #tpu.memory_space<vmem>>, %arg12: memref<128x128xf32, #tpu.memory_space<vmem>>, %arg13: memref<1x128xf32, #tpu.memory_space<vmem>>, %arg14: memref<128x128xf32, #tpu.memory_space<vmem>>, %arg15: memref<1x128xf32, #tpu.memory_space<vmem>>, %arg16: memref<16x128xf32, #tpu.memory_space<vmem>>) attributes {dimension_semantics = [#tpu.dimension_semantics<parallel>], iteration_bounds = array<i64: 1>, scalar_prefetch = 0 : i64, scratch_operands = 0 : i64, tpu.core_type = #tpu.core_type<tc>, window_params = [{transform_indices = @transform_0, window_bounds = array<i64: 16, 128>}, {transform_indices = @transform_1, window_bounds = array<i64: 16, 128>}, {pipeline_mode = #tpu.pipeline_mode<synchronous>, transform_indices = @transform_2, window_bounds = array<i64: 128, 128>}, {pipeline_mode = #tpu.pipeline_mode<synchronous>, transform_indices = @transform_3, window_bounds = array<i64: 1, 128>}, {pipeline_mode = #tpu.pipeline_mode<synchronous>, transform_indices = @transform_4, window_bounds = array<i64: 128, 128>}, {pipeline_mode = #tpu.pipeline_mode<synchronous>, transform_indices = @transform_5, window_bounds = array<i64: 1, 128>}, {pipeline_mode = #tpu.pipeline_mode<synchronous>, transform_indices = @transform_6, window_bounds = array<i64: 128, 256>}, {pipeline_mode = #tpu.pipeline_mode<synchronous>, transform_indices = @transform_7, window_bounds = array<i64: 1, 256>}, {pipeline_mode = #tpu.pipeline_mode<synchronous>, transform_indices = @transform_8, window_bounds = array<i64: 128, 128>}, {pipeline_mode = #tpu.pipeline_mode<synchronous>, transform_indices = @transform_9, window_bounds = array<i64: 128, 128>}, {pipeline_mode = #tpu.pipeline_mode<synchronous>, transform_indices = @transform_10, window_bounds = array<i64: 1, 128>}, {pipeline_mode = #tpu.pipeline_mode<synchronous>, transform_indices = @transform_11, window_bounds = array<i64: 128, 128>}, {pipeline_mode = #tpu.pipeline_mode<synchronous>, transform_indices = @transform_12, window_bounds = array<i64: 1, 128>}, {pipeline_mode = #tpu.pipeline_mode<synchronous>, transform_indices = @transform_13, window_bounds = array<i64: 128, 128>}, {pipeline_mode = #tpu.pipeline_mode<synchronous>, transform_indices = @transform_14, window_bounds = array<i64: 1, 128>}, {transform_indices = @transform_15, window_bounds = array<i64: 16, 128>}]} {
    %c0 = arith.constant 0 : index
    %c0_0 = arith.constant 0 : index
    %0 = vector.load %arg1[%c0, %c0_0] : memref<16x128xf32, #tpu.memory_space<vmem>>, vector<16x128xf32>
    %c0_1 = arith.constant 0 : index
    %c0_2 = arith.constant 0 : index
    %1 = vector.load %arg3[%c0_1, %c0_2] : memref<128x128xf32, #tpu.memory_space<vmem>>, vector<128x128xf32>
    %cst = arith.constant dense<0.000000e+00> : vector<16x128xf32>
    %2 = tpu.matmul %0, %1, %cst {dimension_numbers = #tpu.dot_dimension_numbers<[1], [0], [0], [1], [0, 0, 1, 1], [], []>} : vector<16x128xf32>, vector<128x128xf32>, vector<16x128xf32> -> vector<16x128xf32>
    %c0_3 = arith.constant 0 : index
    %c0_4 = arith.constant 0 : index
    %3 = vector.load %arg4[%c0_3, %c0_4] : memref<1x128xf32, #tpu.memory_space<vmem>>, vector<1x128xf32>
    %4 = vector.broadcast %3 : vector<1x128xf32> to vector<16x128xf32>
    %5 = arith.addf %2, %4 : vector<16x128xf32>
    %cst_5 = arith.constant 0.000000e+00 : f32
    %6 = vector.broadcast %cst_5 : f32 to vector<16x128xf32>
    %7 = arith.maximumf %5, %6 : vector<16x128xf32>
    %c0_6 = arith.constant 0 : index
    %c0_7 = arith.constant 0 : index
    %8 = vector.load %arg5[%c0_6, %c0_7] : memref<128x128xf32, #tpu.memory_space<vmem>>, vector<128x128xf32>
    %cst_8 = arith.constant dense<0.000000e+00> : vector<16x128xf32>
    %9 = tpu.matmul %7, %8, %cst_8 {dimension_numbers = #tpu.dot_dimension_numbers<[1], [0], [0], [1], [0, 0, 1, 1], [], []>} : vector<16x128xf32>, vector<128x128xf32>, vector<16x128xf32> -> vector<16x128xf32>
    %c0_9 = arith.constant 0 : index
    %c0_10 = arith.constant 0 : index
    %10 = vector.load %arg6[%c0_9, %c0_10] : memref<1x128xf32, #tpu.memory_space<vmem>>, vector<1x128xf32>
    %11 = vector.broadcast %10 : vector<1x128xf32> to vector<16x128xf32>
    %12 = arith.addf %9, %11 : vector<16x128xf32>
    %cst_11 = arith.constant 0.000000e+00 : f32
    %13 = vector.broadcast %cst_11 : f32 to vector<16x128xf32>
    %14 = arith.maximumf %12, %13 : vector<16x128xf32>
    %c0_12 = arith.constant 0 : index
    %c0_13 = arith.constant 0 : index
    %15 = vector.load %arg7[%c0_12, %c0_13] : memref<128x256xf32, #tpu.memory_space<vmem>>, vector<128x256xf32>
    %cst_14 = arith.constant dense<0.000000e+00> : vector<16x256xf32>
    %16 = tpu.matmul %14, %15, %cst_14 {dimension_numbers = #tpu.dot_dimension_numbers<[1], [0], [0], [1], [0, 0, 1, 1], [], []>} : vector<16x128xf32>, vector<128x256xf32>, vector<16x256xf32> -> vector<16x256xf32>
    %c0_15 = arith.constant 0 : index
    %c0_16 = arith.constant 0 : index
    %17 = vector.load %arg8[%c0_15, %c0_16] : memref<1x256xf32, #tpu.memory_space<vmem>>, vector<1x256xf32>
    %18 = vector.broadcast %17 : vector<1x256xf32> to vector<16x256xf32>
    %19 = arith.addf %16, %18 : vector<16x256xf32>
    %20 = vector.extract_strided_slice %19 {offsets = [0, 0], sizes = [16, 128], strides = [1, 1]} : vector<16x256xf32> to vector<16x128xf32>
    %21 = vector.extract_strided_slice %19 {offsets = [0, 128], sizes = [16, 128], strides = [1, 1]} : vector<16x256xf32> to vector<16x128xf32>
    %cst_17 = arith.constant -1.000000e+01 : f32
    %cst_18 = arith.constant 2.000000e+00 : f32
    %22 = vector.broadcast %cst_17 : f32 to vector<16x128xf32>
    %23 = arith.maximumf %22, %21 : vector<16x128xf32>
    %24 = vector.broadcast %cst_18 : f32 to vector<16x128xf32>
    %25 = arith.minimumf %24, %23 : vector<16x128xf32>
    %26 = math.exp %25 : vector<16x128xf32>
    %c0_19 = arith.constant 0 : index
    %c0_20 = arith.constant 0 : index
    %27 = vector.load %arg2[%c0_19, %c0_20] : memref<16x128xf32, #tpu.memory_space<vmem>>, vector<16x128xf32>
    %28 = arith.mulf %26, %27 : vector<16x128xf32>
    %29 = arith.addf %20, %28 : vector<16x128xf32>
    %30 = math.tanh %29 : vector<16x128xf32>
    %cst_21 = arith.constant 2.500000e-01 : f32
    %31 = vector.broadcast %cst_21 : f32 to vector<16x128xf32>
    %32 = arith.mulf %30, %31 : vector<16x128xf32>
    %c0_22 = arith.constant 0 : index
    %c0_23 = arith.constant 0 : index
    %33 = vector.load %arg9[%c0_22, %c0_23] : memref<128x128xf32, #tpu.memory_space<vmem>>, vector<128x128xf32>
    %cst_24 = arith.constant dense<0.000000e+00> : vector<16x128xf32>
    %34 = tpu.matmul %0, %33, %cst_24 {dimension_numbers = #tpu.dot_dimension_numbers<[1], [0], [0], [1], [0, 0, 1, 1], [], []>} : vector<16x128xf32>, vector<128x128xf32>, vector<16x128xf32> -> vector<16x128xf32>
    %c0_25 = arith.constant 0 : index
    %c0_26 = arith.constant 0 : index
    %35 = vector.load %arg10[%c0_25, %c0_26] : memref<128x128xf32, #tpu.memory_space<vmem>>, vector<128x128xf32>
    %cst_27 = arith.constant dense<0.000000e+00> : vector<16x128xf32>
    %36 = tpu.matmul %32, %35, %cst_27 {dimension_numbers = #tpu.dot_dimension_numbers<[1], [0], [0], [1], [0, 0, 1, 1], [], []>} : vector<16x128xf32>, vector<128x128xf32>, vector<16x128xf32> -> vector<16x128xf32>
    %37 = arith.addf %34, %36 : vector<16x128xf32>
    %c0_28 = arith.constant 0 : index
    %c0_29 = arith.constant 0 : index
    %38 = vector.load %arg11[%c0_28, %c0_29] : memref<1x128xf32, #tpu.memory_space<vmem>>, vector<1x128xf32>
    %39 = vector.broadcast %38 : vector<1x128xf32> to vector<16x128xf32>
    %40 = arith.addf %37, %39 : vector<16x128xf32>
    %cst_30 = arith.constant 0.000000e+00 : f32
    %41 = vector.broadcast %cst_30 : f32 to vector<16x128xf32>
    %42 = arith.maximumf %40, %41 : vector<16x128xf32>
    %c0_31 = arith.constant 0 : index
    %c0_32 = arith.constant 0 : index
    %43 = vector.load %arg12[%c0_31, %c0_32] : memref<128x128xf32, #tpu.memory_space<vmem>>, vector<128x128xf32>
    %cst_33 = arith.constant dense<0.000000e+00> : vector<16x128xf32>
    %44 = tpu.matmul %42, %43, %cst_33 {dimension_numbers = #tpu.dot_dimension_numbers<[1], [0], [0], [1], [0, 0, 1, 1], [], []>} : vector<16x128xf32>, vector<128x128xf32>, vector<16x128xf32> -> vector<16x128xf32>
    %c0_34 = arith.constant 0 : index
    %c0_35 = arith.constant 0 : index
    %45 = vector.load %arg13[%c0_34, %c0_35] : memref<1x128xf32, #tpu.memory_space<vmem>>, vector<1x128xf32>
    %46 = vector.broadcast %45 : vector<1x128xf32> to vector<16x128xf32>
    %47 = arith.addf %44, %46 : vector<16x128xf32>
    %cst_36 = arith.constant 0.000000e+00 : f32
    %48 = vector.broadcast %cst_36 : f32 to vector<16x128xf32>
    %49 = arith.maximumf %47, %48 : vector<16x128xf32>
    %c0_37 = arith.constant 0 : index
    %c0_38 = arith.constant 0 : index
    %50 = vector.load %arg14[%c0_37, %c0_38] : memref<128x128xf32, #tpu.memory_space<vmem>>, vector<128x128xf32>
    %cst_39 = arith.constant dense<0.000000e+00> : vector<16x128xf32>
    %51 = tpu.matmul %49, %50, %cst_39 {dimension_numbers = #tpu.dot_dimension_numbers<[1], [0], [0], [1], [0, 0, 1, 1], [], []>} : vector<16x128xf32>, vector<128x128xf32>, vector<16x128xf32> -> vector<16x128xf32>
    %c0_40 = arith.constant 0 : index
    %c0_41 = arith.constant 0 : index
    %52 = vector.load %arg15[%c0_40, %c0_41] : memref<1x128xf32, #tpu.memory_space<vmem>>, vector<1x128xf32>
    %53 = vector.broadcast %52 : vector<1x128xf32> to vector<16x128xf32>
    %54 = arith.addf %51, %53 : vector<16x128xf32>
    %55 = math.tanh %54 : vector<16x128xf32>
    %cst_42 = arith.constant 1.000000e+00 : f32
    %56 = vector.broadcast %cst_42 : f32 to vector<16x128xf32>
    %57 = arith.mulf %56, %55 : vector<16x128xf32>
    %c0_43 = arith.constant 0 : index
    %c0_44 = arith.constant 0 : index
    %58 = vector.load %arg16[%c0_43, %c0_44] : memref<16x128xf32, #tpu.memory_space<vmem>>, vector<16x128xf32>
    tpu.vector_store %arg16[%c0_43, %c0_44], %57 {strides = array<i32>} : memref<16x128xf32, #tpu.memory_space<vmem>>, vector<16x128xf32>,
    return
  }
  func.func @transform_0(%arg0: i32) -> (i32, i32) {
    %c0_i32 = arith.constant 0 : i32
    %c0_i32_0 = arith.constant 0 : i32
    return %arg0, %c0_i32 : i32, i32
  }
  func.func @transform_1(%arg0: i32) -> (i32, i32) {
    %c0_i32 = arith.constant 0 : i32
    %c0_i32_0 = arith.constant 0 : i32
    return %arg0, %c0_i32 : i32, i32
  }
  func.func @transform_2(%arg0: i32) -> (i32, i32) {
    %c0_i32 = arith.constant 0 : i32
    %c0_i32_0 = arith.constant 0 : i32
    %c0_i32_1 = arith.constant 0 : i32
    return %c0_i32, %c0_i32_0 : i32, i32
  }
  func.func @transform_3(%arg0: i32) -> (i32, i32) {
    %c0_i32 = arith.constant 0 : i32
    %c0_i32_0 = arith.constant 0 : i32
    %c0_i32_1 = arith.constant 0 : i32
    return %c0_i32, %c0_i32_0 : i32, i32
  }
  func.func @transform_4(%arg0: i32) -> (i32, i32) {
    %c0_i32 = arith.constant 0 : i32
    %c0_i32_0 = arith.constant 0 : i32
    %c0_i32_1 = arith.constant 0 : i32
    return %c0_i32, %c0_i32_0 : i32, i32
  }
  func.func @transform_5(%arg0: i32) -> (i32, i32) {
    %c0_i32 = arith.constant 0 : i32
    %c0_i32_0 = arith.constant 0 : i32
    %c0_i32_1 = arith.constant 0 : i32
    return %c0_i32, %c0_i32_0 : i32, i32
  }
  func.func @transform_6(%arg0: i32) -> (i32, i32) {
    %c0_i32 = arith.constant 0 : i32
    %c0_i32_0 = arith.constant 0 : i32
    %c0_i32_1 = arith.constant 0 : i32
    return %c0_i32, %c0_i32_0 : i32, i32
  }
  func.func @transform_7(%arg0: i32) -> (i32, i32) {
    %c0_i32 = arith.constant 0 : i32
    %c0_i32_0 = arith.constant 0 : i32
    %c0_i32_1 = arith.constant 0 : i32
    return %c0_i32, %c0_i32_0 : i32, i32
  }
  func.func @transform_8(%arg0: i32) -> (i32, i32) {
    %c0_i32 = arith.constant 0 : i32
    %c0_i32_0 = arith.constant 0 : i32
    %c0_i32_1 = arith.constant 0 : i32
    return %c0_i32, %c0_i32_0 : i32, i32
  }
  func.func @transform_9(%arg0: i32) -> (i32, i32) {
    %c0_i32 = arith.constant 0 : i32
    %c0_i32_0 = arith.constant 0 : i32
    %c0_i32_1 = arith.constant 0 : i32
    return %c0_i32, %c0_i32_0 : i32, i32
  }
  func.func @transform_10(%arg0: i32) -> (i32, i32) {
    %c0_i32 = arith.constant 0 : i32
    %c0_i32_0 = arith.constant 0 : i32
    %c0_i32_1 = arith.constant 0 : i32
    return %c0_i32, %c0_i32_0 : i32, i32
  }
  func.func @transform_11(%arg0: i32) -> (i32, i32) {
    %c0_i32 = arith.constant 0 : i32
    %c0_i32_0 = arith.constant 0 : i32
    %c0_i32_1 = arith.constant 0 : i32
    return %c0_i32, %c0_i32_0 : i32, i32
  }
  func.func @transform_12(%arg0: i32) -> (i32, i32) {
    %c0_i32 = arith.constant 0 : i32
    %c0_i32_0 = arith.constant 0 : i32
    %c0_i32_1 = arith.constant 0 : i32
    return %c0_i32, %c0_i32_0 : i32, i32
  }
  func.func @transform_13(%arg0: i32) -> (i32, i32) {
    %c0_i32 = arith.constant 0 : i32
    %c0_i32_0 = arith.constant 0 : i32
    %c0_i32_1 = arith.constant 0 : i32
    return %c0_i32, %c0_i32_0 : i32, i32
  }
  func.func @transform_14(%arg0: i32) -> (i32, i32) {
    %c0_i32 = arith.constant 0 : i32
    %c0_i32_0 = arith.constant 0 : i32
    %c0_i32_1 = arith.constant 0 : i32
    return %c0_i32, %c0_i32_0 : i32, i32
  }
  func.func @transform_15(%arg0: i32) -> (i32, i32) {
    %c0_i32 = arith.constant 0 : i32
    %c0_i32_0 = arith.constant 0 : i32
    return %arg0, %c0_i32 : i32, i32
  }
}

</mosaic_0001>

<bundles_post_ra>
// kernel: tpu_custom_call.1
= control target key start
LH: loop header
LB: loop body
LE: loop exit
PB: predicated region body
PF: predicated region fallthrough
CT: control target
= control target key end

     0   :  { %20 = vsyncpa [#allocation3], 0  ;;  %s1670_s0 = inlined_call_operand.hbm [shape: f32[16,128], index: 0, kind: input, shape index: {}]   ;;  %s1671_s1 = inlined_call_operand.hbm [shape: f32[16,128], index: 1, kind: input, shape index: {}]   ;;  %s1672_s2 = inlined_call_operand.hbm [shape: f32[128,128], index: 2, kind: input, shape index: {}]   ;;  %s1673_s3 = inlined_call_operand.vmem [shape: f32[1,128], index: 3, kind: input, shape index: {}]   ;;  %s1674_s4 = inlined_call_operand.hbm [shape: f32[128,128], index: 4, kind: input, shape index: {}]   ;;  %s1675_s5 = inlined_call_operand.vmem [shape: f32[1,128], index: 5, kind: input, shape index: {}]   ;;  %s1676_s6 = inlined_call_operand.hbm [shape: f32[128,256], index: 6, kind: input, shape index: {}]   ;;  %s1677_s7 = inlined_call_operand.vmem [shape: f32[1,256], index: 7, kind: input, shape index: {}]   ;;  %s1678_s8 = inlined_call_operand.hbm [shape: f32[128,128], index: 8, kind: input, shape index: {}]   ;;  %s1679_s9 = inlined_call_operand.hbm [shape: f32[128,128], index: 9, kind: input, shape index: {}]   ;;  %s1680_s10 = inlined_call_operand.vmem [shape: f32[1,128], index: 10, kind: input, shape index: {}]   ;;  %s1681_s11 = inlined_call_operand.hbm [shape: f32[128,128], index: 11, kind: input, shape index: {}]   ;;  %s1682_s12 = inlined_call_operand.vmem [shape: f32[1,128], index: 12, kind: input, shape index: {}]   ;;  %s1683_s13 = inlined_call_operand.hbm [shape: f32[128,128], index: 13, kind: input, shape index: {}]   ;;  %s1684_s14 = inlined_call_operand.vmem [shape: f32[1,128], index: 14, kind: input, shape index: {}]   ;;  %s1685_s15 = inlined_call_operand.hbm [shape: f32[16,128], index: 15, kind: output, shape index: {}]  }
   0x1   :  { %21 = vsyncpa [#allocation6], 0 }
   0x2   :  { %22 = vsyncpa [#allocation9], 0 }
   0x3   :  { %23 = vsyncpa [#allocation12], 0 }
   0x4   :  { %24 = vsyncpa [#allocation15], 0 }
   0x5   :  { %25 = vsyncpa [#allocation4], 0  ;;  %s1492_s18 = smov [#allocation5]   ;;  %s1493_s20 = smov [#allocation8]  }
   0x6   :  { %s43_s19 = sshll.u32 %s1492_s18, 4  ;;  %s69_s21 = sshll.u32 %s1493_s20, 4  ;;  %s44_s19 = int_to_ptr.vmem [resolvable:$true] %s43_s19  ;;  %s70_s21 = int_to_ptr.vmem [resolvable:$true] %s69_s21 }
   0x7   :  { %s1288_s22 = scalar_lea.vmem %s44_s19, 256  ;;  %p1293_p1 = scmp.lt.s32.totalorder %s44_s19, %s44_s19 }
   0x8   :  { %p1289_p0 = scmp.ne.s32.totalorder %s44_s19, %s1288_s22  ;;  %p1294_p2 = scmp.lt.s32.totalorder %s1288_s22, %s1288_s22 }
   0xa   :  { %p1295_p3 = por %p1294_p2, %p1293_p1 }
   0xc   :  { %p1296_p4 = pnand %p1295_p3, %p1289_p0 }
   0xe   :  { %1299 = shalt.err (!%p1296_p4)
}
   0xf   :  { %s1494_s23 = smov 128   ;;  %s1495_s24 = smov 8  }
  0x10   :  { %49 = dma.hbm_to_vmem [thread:$0]  %s1671_s1, 256, %s44_s19, [#allocation6], %s1494_s23, %s1494_s23, %s1495_s24  }
  0x11   :  { %s1308_s27 = scalar_lea.vmem %s70_s21, 2048  ;;  %p1313_p6 = scmp.lt.s32.totalorder %s70_s21, %s70_s21 }
  0x12   :  { %p1309_p5 = scmp.ne.s32.totalorder %s70_s21, %s1308_s27  ;;  %p1314_p7 = scmp.lt.s32.totalorder %s1308_s27, %s1308_s27 }
  0x14   :  { %p1315_p8 = por %p1314_p7, %p1313_p6 }
  0x16   :  { %p1316_p9 = pnand %p1315_p8, %p1309_p5 }
  0x18   :  { %1319 = shalt.err (!%p1316_p9)
}
  0x19   :  { %75 = dma.hbm_to_vmem [thread:$0]  %s1674_s4, 2048, %s70_s21, [#allocation9], %s1494_s23, %s1494_s23, %s1495_s24  }
  0x1a   :  { %s1496_s30 = smov [#allocation11]   ;;  %s1497_s17 = smov [#allocation14]  }
  0x1b   :  { %s97_s16 = sshll.u32 %s1496_s30, 4  ;;  %s123_s18 = sshll.u32 %s1497_s17, 4  ;;  %s98_s16 = int_to_ptr.vmem [resolvable:$true] %s97_s16  ;;  %s124_s18 = int_to_ptr.vmem [resolvable:$true] %s123_s18 }
  0x1c   :  { %s1328_s1 = scalar_lea.vmem %s98_s16, 2048  ;;  %p1333_p11 = scmp.lt.s32.totalorder %s98_s16, %s98_s16 }
  0x1d   :  { %p1329_p10 = scmp.ne.s32.totalorder %s98_s16, %s1328_s1  ;;  %p1334_p12 = scmp.lt.s32.totalorder %s1328_s1, %s1328_s1 }
  0x1f   :  { %p1335_p13 = por %p1334_p12, %p1333_p11 }
  0x21   :  { %p1336_p0 = pnand %p1335_p13, %p1329_p10 }
  0x23   :  { %1339 = shalt.err (!%p1336_p0)
}
  0x24   :  { %103 = dma.hbm_to_vmem [thread:$0]  %s1678_s8, 2048, %s98_s16, [#allocation12], %s1494_s23, %s1494_s23, %s1495_s24  }
  0x25   :  { %s1348_s4 = scalar_lea.vmem %s124_s18, 2048  ;;  %p1353_p2 = scmp.lt.s32.totalorder %s124_s18, %s124_s18 }
  0x26   :  { %p1349_p1 = scmp.ne.s32.totalorder %s124_s18, %s1348_s4  ;;  %p1354_p3 = scmp.lt.s32.totalorder %s1348_s4, %s1348_s4 }
  0x28   :  { %p1355_p4 = por %p1354_p3, %p1353_p2 }
  0x2a   :  { %p1356_p5 = pnand %p1355_p4, %p1349_p1 }
  0x2c   :  { %1359 = shalt.err (!%p1356_p5)
}
  0x2d   :  { %129 = dma.hbm_to_vmem [thread:$0]  %s1681_s11, 2048, %s124_s18, [#allocation15], %s1494_s23, %s1494_s23, %s1495_s24  }
  0x2e   :  { %s1498_s25 = smov [#allocation2]   ;;  %s1499_s27 = smov [#allocation7]  }
  0x2f   :  { %s31_s26 = sshll.u32 %s1498_s25, 4  ;;  %s55_s28 = sshll.u32 %s1499_s27, 4  ;;  %s32_s26 = int_to_ptr.vmem [resolvable:$true] %s31_s26  ;;  %s56_s28 = int_to_ptr.vmem [resolvable:$true] %s55_s28 }
  0x30   :  { %s1368_s8 = scalar_lea.vmem %s32_s26, 256  ;;  %p1373_p7 = scmp.lt.s32.totalorder %s32_s26, %s32_s26 }
  0x31   :  { %p1369_p6 = scmp.ne.s32.totalorder %s32_s26, %s1368_s8  ;;  %p1374_p8 = scmp.lt.s32.totalorder %s1368_s8, %s1368_s8 }
  0x33   :  { %p1375_p9 = por %p1374_p8, %p1373_p7 }
  0x35   :  { %p1376_p10 = pnand %p1375_p9, %p1369_p6 }
  0x37   :  { %1379 = shalt.err (!%p1376_p10)
}
  0x38   :  { %37 = dma.hbm_to_vmem [thread:$0]  %s1670_s0, 256, %s32_s26, [#allocation3], %s1494_s23, %s1494_s23, %s1495_s24  }
  0x39   :  { %s1388_s11 = scalar_lea.vmem %s56_s28, 2048  ;;  %p1393_p12 = scmp.lt.s32.totalorder %s56_s28, %s56_s28 }
  0x3a   :  { %p1389_p11 = scmp.ne.s32.totalorder %s56_s28, %s1388_s11  ;;  %p1394_p13 = scmp.lt.s32.totalorder %s1388_s11, %s1388_s11 }
  0x3c   :  { %p1395_p0 = por %p1394_p13, %p1393_p12 }
  0x3e   :  { %p1396_p1 = pnand %p1395_p0, %p1389_p11 }
  0x40   :  { %1399 = shalt.err (!%p1396_p1)
}
  0x41   :  { %61 = dma.hbm_to_vmem [thread:$0]  %s1672_s2, 2048, %s56_s28, [#allocation6], %s1494_s23, %s1494_s23, %s1495_s24  }
  0x42   :  { %s1500_s18 = smov [#allocation10]  }
  0x43   :  { %s83_s1 = sshll.u32 %s1500_s18, 4  ;;  %s84_s1 = int_to_ptr.vmem [resolvable:$true] %s83_s1 }
  0x44   :  { %s1408_s19 = scalar_lea.vmem %s84_s1, 4096  ;;  %p1413_p3 = scmp.lt.s32.totalorder %s84_s1, %s84_s1 }
  0x45   :  { %p1409_p2 = scmp.ne.s32.totalorder %s84_s1, %s1408_s19  ;;  %p1414_p4 = scmp.lt.s32.totalorder %s1408_s19, %s1408_s19 }
  0x47   :  { %p1415_p5 = por %p1414_p4, %p1413_p3 }
  0x49   :  { %p1416_p6 = pnand %p1415_p5, %p1409_p2 }
  0x4b   :  { %1419 = shalt.err (!%p1416_p6)
}
  0x4c   :  { %s1501_s0 = smov 256   ;;  %s1502_s20 = smov 16  }
  0x4d   :  { %89 = dma.hbm_to_vmem [thread:$0]  %s1676_s6, 4096, %s84_s1, [#allocation9], %s1501_s0, %s1501_s0, %s1502_s20  }
  0x4e   :  { %s1503_s22 = smov [#allocation13]   ;;  %s1504_s2 = smov [#allocation16]  }
  0x4f   :  { %s109_s25 = sshll.u32 %s1503_s22, 4  ;;  %s137_s26 = sshll.u32 %s1504_s2, 4  ;;  %s110_s25 = int_to_ptr.vmem [resolvable:$true] %s109_s25  ;;  %s138_s26 = int_to_ptr.vmem [resolvable:$true] %s137_s26 }
  0x50   :  { %s1428_s27 = scalar_lea.vmem %s110_s25, 2048  ;;  %p1433_p8 = scmp.lt.s32.totalorder %s110_s25, %s110_s25 }
  0x51   :  { %p1429_p7 = scmp.ne.s32.totalorder %s110_s25, %s1428_s27  ;;  %p1434_p9 = scmp.lt.s32.totalorder %s1428_s27, %s1428_s27 }
  0x53   :  { %p1435_p10 = por %p1434_p9, %p1433_p8 }
  0x55   :  { %p1436_p11 = pnand %p1435_p10, %p1429_p7 }
  0x57   :  { %1439 = shalt.err (!%p1436_p11)
}
  0x58   :  { %115 = dma.hbm_to_vmem [thread:$0]  %s1679_s9, 2048, %s110_s25, [#allocation12], %s1494_s23, %s1494_s23, %s1495_s24  }
  0x59   :  { %s1448_s6 = scalar_lea.vmem %s138_s26, 2048  ;;  %p1453_p13 = scmp.lt.s32.totalorder %s138_s26, %s138_s26 }
  0x5a   :  { %p1449_p12 = scmp.ne.s32.totalorder %s138_s26, %s1448_s6  ;;  %p1454_p0 = scmp.lt.s32.totalorder %s1448_s6, %s1448_s6 }
  0x5c   :  { %p1455_p1 = por %p1454_p0, %p1453_p13 }
  0x5e   :  { %p1456_p2 = pnand %p1455_p1, %p1449_p12 }
  0x60   :  { %1459 = shalt.err (!%p1456_p2)
}
  0x61   :  { %143 = dma.hbm_to_vmem [thread:$0]  %s1683_s13, 2048, %s138_s26, [#allocation15], %s1494_s23, %s1494_s23, %s1495_s24  }
  0x62   :  { %1480 = dma.done.wait [#allocation3], 256  }
  0x63   :  { %1481 = vsyncadd [#allocation3], 4294967040 }
  0x64   :  { %1482 = dma.done.wait [#allocation6], 2304  }
  0x65   :  { %1483 = vsyncadd [#allocation6], 4294964992 }
  0x66   :  { %1484 = dma.done.wait [#allocation9], 6144  }
  0x67   :  { %1485 = vsyncadd [#allocation9], 4294961152 }
  0x68   :  { %1486 = dma.done.wait [#allocation12], 4096  }
  0x69   :  { %1487 = vsyncadd [#allocation12], 4294963200 }
  0x6a   :  { %1488 = dma.done.wait [#allocation15], 4096  }
  0x6b   :  { %1489 = vsyncadd [#allocation15], 4294963200  ;;  %v190_v0 = vld [vmem:[#allocation7 + $0x78] sm:$0xff]  ;;  %v189_v1 = vld [vmem:[#allocation7 + $0x70] sm:$0xff]  ;;  %s1506_s0 = smov [#allocation17]  }
  0x6c   :  { %1043 = vmatprep.subr.mxu0 %v190_v0  ;;  %v188_v2 = vld [vmem:[#allocation7 + $0x68] sm:$0xff]  ;;  %v187_v3 = vld [vmem:[#allocation7 + $0x60] sm:$0xff]  ;;  %v186_v5 = vld [vmem:[#allocation7 + $0x58] sm:$0xff] }
  0x6d   :  { %1044 = vmatpush3.msra.mxu0 %v190_v0  ;;  %v1638_v4 = vld [vmem:[#allocation2] sm:$0xff]  ;;  %v290_v6 = vld [vmem:[#allocation8 + $0x78] sm:$0xff]  ;;  %v289_v7 = vld [vmem:[#allocation8 + $0x70] sm:$0xff] }
  0x6e   :  { %1045 = vmatprep.subr.mxu0 %v189_v1  ;;  %1075 = vmatprep.mubr.f32.mxu0 %v1638_v4  ;;  %v185_v8 = vld [vmem:[#allocation7 + $0x50] sm:$0xff]  ;;  %v288_v9 = vld [vmem:[#allocation8 + $0x68] sm:$0xff]  ;;  %v287_v11 = vld [vmem:[#allocation8 + $0x60] sm:$0xff] }
  0x6f   :  { %1046 = vmatpush3.msra.mxu0 %v189_v1  ;;  %1078 = vmatprep.subr.mxu1 %v290_v6  ;;  %v184_v10 = vld [vmem:[#allocation7 + $0x48] sm:$0xff]  ;;  %v183_v12 = vld [vmem:[#allocation7 + $0x40] sm:$0xff]  ;;  %v286_v13 = vld [vmem:[#allocation8 + $0x58] sm:$0xff] }
  0x70   :  { %1047 = vmatprep.subr.mxu0 %v188_v2  ;;  %1079 = vmatpush3.msra.mxu1 %v290_v6  ;;  %v182_v14 = vld [vmem:[#allocation7 + $0x38] sm:$0xff]  ;;  %v285_v15 = vld [vmem:[#allocation8 + $0x50] sm:$0xff]  ;;  %v284_v17 = vld [vmem:[#allocation8 + $0x48] sm:$0xff] }
  0x71   :  { %1048 = vmatpush3.msra.mxu0 %v188_v2  ;;  %1080 = vmatprep.subr.mxu1 %v289_v7  ;;  %v181_v16 = vld [vmem:[#allocation7 + $0x30] sm:$0xff]  ;;  %v180_v18 = vld [vmem:[#allocation7 + $0x28] sm:$0xff]  ;;  %v283_v19 = vld [vmem:[#allocation8 + $0x40] sm:$0xff] }
  0x72   :  { %1049 = vmatprep.subr.mxu0 %v187_v3  ;;  %1081 = vmatpush3.msra.mxu1 %v289_v7  ;;  %v179_v20 = vld [vmem:[#allocation7 + $0x20] sm:$0xff]  ;;  %v282_v21 = vld [vmem:[#allocation8 + $0x38] sm:$0xff]  ;;  %v281_v23 = vld [vmem:[#allocation8 + $0x30] sm:$0xff] }
  0x73   :  { %1050 = vmatpush3.msra.mxu0 %v187_v3  ;;  %1082 = vmatprep.subr.mxu1 %v288_v9  ;;  %v178_v22 = vld [vmem:[#allocation7 + $0x18] sm:$0xff]  ;;  %v177_v24 = vld [vmem:[#allocation7 + $0x10] sm:$0xff]  ;;  %v280_v25 = vld [vmem:[#allocation8 + $0x28] sm:$0xff] }
  0x74   :  { %1051 = vmatprep.subr.mxu0 %v186_v5  ;;  %1083 = vmatpush3.msra.mxu1 %v288_v9  ;;  %v176_v26 = vld [vmem:[#allocation7 + $0x8] sm:$0xff]  ;;  %v279_v27 = vld [vmem:[#allocation8 + $0x20] sm:$0xff]  ;;  %v278_v30 = vld [vmem:[#allocation8 + $0x18] sm:$0xff] }
  0x75   :  { %1052 = vmatpush3.msra.mxu0 %v186_v5  ;;  %1084 = vmatprep.subr.mxu1 %v287_v11  ;;  %v175_v28 = vld [vmem:[#allocation7] sm:$0xff]  ;;  %v1641_v29 = vld [vmem:[#allocation2 + $0x8] sm:$0xff]  ;;  %v277_v31 = vld [vmem:[#allocation8 + $0x10] sm:$0xff] }
  0x76   :  { %1053 = vmatprep.subr.mxu0 %v185_v8  ;;  %1085 = vmatpush3.msra.mxu1 %v287_v11  ;;  %v276_v32 = vld [vmem:[#allocation8 + $0x8] sm:$0xff]  ;;  %v275_v33 = vld [vmem:[#allocation8] sm:$0xff]  ;;  %v406_v34 = vld [vmem:[#allocation10 + $0xf8] sm:$0xff] }
  0x77   :  { %1054 = vmatpush3.msra.mxu0 %v185_v8  ;;  %1086 = vmatprep.subr.mxu1 %v286_v13  ;;  %v405_v35 = vld [vmem:[#allocation10 + $0xf0] sm:$0xff]  ;;  %v404_v36 = vld [vmem:[#allocation10 + $0xe8] sm:$0xff]  ;;  %v403_v37 = vld [vmem:[#allocation10 + $0xe0] sm:$0xff] }
  0x78   :  { %1055 = vmatprep.subr.mxu0 %v184_v10  ;;  %1087 = vmatpush3.msra.mxu1 %v286_v13  ;;  %v402_v38 = vld [vmem:[#allocation10 + $0xd8] sm:$0xff]  ;;  %v401_v39 = vld [vmem:[#allocation10 + $0xd0] sm:$0xff]  ;;  %v400_v40 = vld [vmem:[#allocation10 + $0xc8] sm:$0xff] }
  0x79   :  { %1056 = vmatpush3.msra.mxu0 %v184_v10  ;;  %1088 = vmatprep.subr.mxu1 %v285_v15  ;;  %v399_v41 = vld [vmem:[#allocation10 + $0xc0] sm:$0xff]  ;;  %v398_v42 = vld [vmem:[#allocation10 + $0xb8] sm:$0xff]  ;;  %v397_v43 = vld [vmem:[#allocation10 + $0xb0] sm:$0xff]  ;;  %v1505_v10 = vmov 0.0  }
  0x7a   :  { %1057 = vmatprep.subr.mxu0 %v183_v12  ;;  %1089 = vmatpush3.msra.mxu1 %v285_v15  ;;  %v396_v44 = vld [vmem:[#allocation10 + $0xa8] sm:$0xff]  ;;  %v395_v45 = vld [vmem:[#allocation10 + $0xa0] sm:$0xff]  ;;  %v394_v46 = vld [vmem:[#allocation10 + $0x98] sm:$0xff] }
  0x7b   :  { %1058 = vmatpush3.msra.mxu0 %v183_v12  ;;  %1090 = vmatprep.subr.mxu1 %v284_v17  ;;  %v393_v47 = vld [vmem:[#allocation10 + $0x90] sm:$0xff]  ;;  %v392_v48 = vld [vmem:[#allocation10 + $0x88] sm:$0xff]  ;;  %v391_v49 = vld [vmem:[#allocation10 + $0x80] sm:$0xff] }
  0x7c   :  { %1059 = vmatprep.subr.mxu0 %v182_v14  ;;  %1091 = vmatpush3.msra.mxu1 %v284_v17  ;;  %v390_v50 = vld [vmem:[#allocation10 + $0x78] sm:$0xff]  ;;  %v389_v51 = vld [vmem:[#allocation10 + $0x70] sm:$0xff]  ;;  %v388_v52 = vld [vmem:[#allocation10 + $0x68] sm:$0xff] }
  0x7d   :  { %1060 = vmatpush3.msra.mxu0 %v182_v14  ;;  %1092 = vmatprep.subr.mxu1 %v283_v19  ;;  %v387_v53 = vld [vmem:[#allocation10 + $0x60] sm:$0xff]  ;;  %v386_v54 = vld [vmem:[#allocation10 + $0x58] sm:$0xff]  ;;  %v385_v55 = vld [vmem:[#allocation10 + $0x50] sm:$0xff] }
  0x7e   :  { %1061 = vmatprep.subr.mxu0 %v181_v16  ;;  %1093 = vmatpush3.msra.mxu1 %v283_v19  ;;  %v384_v56 = vld [vmem:[#allocation10 + $0x48] sm:$0xff]  ;;  %v383_v57 = vld [vmem:[#allocation10 + $0x40] sm:$0xff]  ;;  %v382_v58 = vld [vmem:[#allocation10 + $0x38] sm:$0xff] }
  0x7f   :  { %1062 = vmatpush3.msra.mxu0 %v181_v16  ;;  %1094 = vmatprep.subr.mxu1 %v282_v21  ;;  %v930_v59 = vld [vmem:[%s1673_s3] ss:$0 sm:$0xff]  ;;  %v381_v2 = vld [vmem:[#allocation10 + $0x30] sm:$0xff]  ;;  %v380_v3 = vld [vmem:[#allocation10 + $0x28] sm:$0xff] }
  0x80   :  { %1063 = vmatprep.subr.mxu0 %v180_v18  ;;  %1095 = vmatpush3.msra.mxu1 %v282_v21  ;;  %v379_v5 = vld [vmem:[#allocation10 + $0x20] sm:$0xff]  ;;  %v378_v6 = vld [vmem:[#allocation10 + $0x18] sm:$0xff]  ;;  %v377_v7 = vld [vmem:[#allocation10 + $0x10] sm:$0xff] }
  0x81   :  { %1064 = vmatpush3.msra.mxu0 %v180_v18  ;;  %1096 = vmatprep.subr.mxu1 %v281_v23  ;;  %v376_v8 = vld [vmem:[#allocation10 + $0x8] sm:$0xff]  ;;  %v375_v9 = vld [vmem:[#allocation10] sm:$0xff]  ;;  %v529_v18 = vld [vmem:[#allocation11 + $0x78] sm:$0xff] }
  0x82   :  { %1065 = vmatprep.subr.mxu0 %v179_v20  ;;  %1097 = vmatpush3.msra.mxu1 %v281_v23  ;;  %v931_v12 = vld [vmem:[%s1675_s5] ss:$0 sm:$0xff]  ;;  %v545_v19 = vld [vmem:[#allocation13 + $0x78] sm:$0xff]  ;;  %v544_v21 = vld [vmem:[#allocation13 + $0x70] sm:$0xff] }
  0x83   :  { %1066 = vmatpush3.msra.mxu0 %v179_v20  ;;  %1098 = vmatprep.subr.mxu1 %v280_v25  ;;  %v528_v20 = vld [vmem:[#allocation11 + $0x70] sm:$0xff]  ;;  %v543_v23 = vld [vmem:[#allocation13 + $0x68] sm:$0xff] }
  0x84   :  { %1067 = vmatprep.subr.mxu0 %v178_v22  ;;  %1099 = vmatpush3.msra.mxu1 %v280_v25  ;;  %v542_v25 = vld [vmem:[#allocation13 + $0x60] sm:$0xff] }
  0x85   :  { %1068 = vmatpush3.msra.mxu0 %v178_v22  ;;  %1100 = vmatprep.subr.mxu1 %v279_v27  ;;  %v527_v22 = vld [vmem:[#allocation11 + $0x68] sm:$0xff] }
  0x86   :  { %1069 = vmatprep.subr.mxu0 %v177_v24  ;;  %1101 = vmatpush3.msra.mxu1 %v279_v27  ;;  %v524_v27 = vld [vmem:[#allocation11 + $0x50] sm:$0xff] }
  0x87   :  { %1070 = vmatpush3.msra.mxu0 %v177_v24  ;;  %1102 = vmatprep.subr.mxu1 %v278_v30  ;;  %v526_v24 = vld [vmem:[#allocation11 + $0x60] sm:$0xff] }
  0x88   :  { %1071 = vmatprep.subr.mxu0 %v176_v26  ;;  %1103 = vmatpush3.msra.mxu1 %v278_v30  ;;  %v523_v30 = vld [vmem:[#allocation11 + $0x48] sm:$0xff] }
  0x89   :  { %1072 = vmatpush3.msra.mxu0 %v176_v26  ;;  %1104 = vmatprep.subr.mxu1 %v277_v31  ;;  %v541_v26 = vld [vmem:[#allocation13 + $0x58] sm:$0xff] }
  0x8a   :  { %1073 = vmatprep.subr.mxu0 %v175_v28  ;;  %1105 = vmatpush3.msra.mxu1 %v277_v31  ;;  %v539_v31 = vld [vmem:[#allocation13 + $0x48] sm:$0xff] }
  0x8b   :  { %1074 = vmatpush3.msra.mxu0 %v175_v28  ;;  %1106 = vmatprep.subr.mxu1 %v276_v32  ;;  %v540_v28 = vld [vmem:[#allocation13 + $0x50] sm:$0xff] }
  0x8c   :  { %1076 = vmatmul.mubr.f32.vlgmr.msra.gmra.mxu0 %v1641_v29  ;;  %1107 = vmatpush3.msra.mxu1 %v276_v32  ;;  %v522_v32 = vld [vmem:[#allocation11 + $0x40] sm:$0xff] }
  0x8d   :  { %1108 = vmatprep.subr.mxu1 %v275_v33  ;;  %419 = vmatprep.subr.mxu0 %v406_v34  ;;  %v521_v34 = vld [vmem:[#allocation11 + $0x38] sm:$0xff] }
  0x8e   :  { %1109 = vmatpush3.msra.mxu1 %v275_v33  ;;  %420 = vmatpush1.msra.mxu0 %v405_v35  ;;  %v538_v33 = vld [vmem:[#allocation13 + $0x40] sm:$0xff]  ;;  %v537_v35 = vld [vmem:[#allocation13 + $0x38] sm:$0xff] }
  0x8f   :  { %421 = vmatprep.subr.mxu0 %v404_v36  ;;  %483 = vmatprep.mubr.f32.mxu0 %v1505_v10  ;;  %v520_v36 = vld [vmem:[#allocation11 + $0x30] sm:$0xff] }
  0x90   :  { %422 = vmatpush1.msra.mxu0 %v403_v37  ;;  %1113 = vmatprep.subr.mxu1 %v545_v19  ;;  %v536_v37 = vld [vmem:[#allocation13 + $0x30] sm:$0xff] }
  0x91   :  { %423 = vmatprep.subr.mxu0 %v402_v38  ;;  %v519_v38 = vld [vmem:[#allocation11 + $0x28] sm:$0xff] }
  0x92   :  { %424 = vmatpush1.msra.mxu0 %v401_v39  ;;  %v535_v39 = vld [vmem:[#allocation13 + $0x28] sm:$0xff] }
  0x93   :  { %425 = vmatprep.subr.mxu0 %v400_v40  ;;  %v518_v40 = vld [vmem:[#allocation11 + $0x20] sm:$0xff] }
  0x94   :  { %426 = vmatpush1.msra.mxu0 %v399_v41  ;;  %v534_v41 = vld [vmem:[#allocation13 + $0x20] sm:$0xff] }
  0x95   :  { %427 = vmatprep.subr.mxu0 %v398_v42  ;;  %v517_v42 = vld [vmem:[#allocation11 + $0x18] sm:$0xff] }
  0x96   :  { %428 = vmatpush1.msra.mxu0 %v397_v43  ;;  %v533_v43 = vld [vmem:[#allocation13 + $0x18] sm:$0xff] }
  0x97   :  { %429 = vmatprep.subr.mxu0 %v396_v44  ;;  %v516_v44 = vld [vmem:[#allocation11 + $0x10] sm:$0xff] }
  0x98   :  { %430 = vmatpush1.msra.mxu0 %v395_v45  ;;  %v532_v45 = vld [vmem:[#allocation13 + $0x10] sm:$0xff] }
  0x99   :  { %431 = vmatprep.subr.mxu0 %v394_v46  ;;  %v515_v46 = vld [vmem:[#allocation11 + $0x8] sm:$0xff] }
  0x9a   :  { %432 = vmatpush1.msra.mxu0 %v393_v47  ;;  %v531_v47 = vld [vmem:[#allocation13 + $0x8] sm:$0xff] }
  0x9b   :  { %433 = vmatprep.subr.mxu0 %v392_v48  ;;  %v514_v48 = vld [vmem:[#allocation11] sm:$0xff] }
  0x9c   :  { %434 = vmatpush1.msra.mxu0 %v391_v49  ;;  %v530_v49 = vld [vmem:[#allocation13] sm:$0xff] }
  0x9d   :  { %435 = vmatprep.subr.mxu0 %v390_v50  ;;  %v722_v50 = vld [vmem:[#allocation14 + $0x78] sm:$0xff] }
  0x9e   :  { %436 = vmatpush1.msra.mxu0 %v389_v51  ;;  %v409_v51 = vlaneseq }
  0x9f   :  { %437 = vmatprep.subr.mxu0 %v388_v52 }
  0xa0   :  { %438 = vmatpush1.msra.mxu0 %v387_v53  ;;  %v410_v52 = vshrl.u32 %v409_v51, 7 }
  0xa1   :  { %439 = vmatprep.subr.mxu0 %v386_v54  ;;  %v407_v54 = vld [vmem:[%s1677_s7] sm:$0x3] }
  0xa2   :  { %440 = vmatpush1.msra.mxu0 %v385_v55  ;;  %v415_v53 = vsub.s32 1, %v410_v52 }
  0xa3   :  { %441 = vmatprep.subr.mxu0 %v384_v56 }
  0xa4   :  { %442 = vmatpush1.msra.mxu0 %v383_v57  ;;  %v416_v55 = vrot.slane %v407_v54, %v415_v53 }
  0xa5   :  { %443 = vmatprep.subr.mxu0 %v382_v58 }
  0xa6   :  { %444 = vmatpush1.msra.mxu0 %v381_v2 }
  0xa7   :  { %445 = vmatprep.subr.mxu0 %v380_v3  ;;  %v411_v3 = vsub.s32 0, %v410_v52 }
  0xa8   :  { %446 = vmatpush1.msra.mxu0 %v379_v5 }
  0xa9   :  { %447 = vmatprep.subr.mxu0 %v378_v6  ;;  %v412_v5 = vrot.slane %v407_v54, %v411_v3  ;;  %v504_v6 = vld [vmem:[#allocation5] sm:$0xff] }
  0xaa   :  { %448 = vmatpush1.msra.mxu0 %v377_v7 }
  0xab   :  { %449 = vmatprep.subr.mxu0 %v376_v8 }
  0xac   :  { %450 = vmatpush1.msra.mxu0 %v375_v9 }
  0xad   :  { %1148 = vmatprep.subr.mxu0 %v529_v18 }
 0x14c   :  { %v1077_v60 = vpop.f32.mrf.mxu0 }
 0x14d   :  { %v270_v61 = vadd.f32 %v1077_v60, %v930_v59 }
 0x14e   :  { %v264_v62 = vpop.f32.mrf.mxu0 }
 0x14f   :  { %v265_v63 = vadd.f32 %v930_v59, %v264_v62  ;;  %v274_v1 = vmax.f32 %v270_v61, 0.0 }
 0x151   :  { %v273_v0 = vmax.f32 %v265_v63, 0.0 }
 0x153   :  { %1110 = vmatprep.mubr.f32.mxu1 %v273_v0 }
 0x154   :  { %1111 = vmatmul.mubr.f32.vlgmr.msra.gmra.mxu1 %v274_v1 }
 0x155   :  { %1114 = vmatpush3.msra.mxu1 %v545_v19 }
 0x156   :  { %1115 = vmatprep.subr.mxu1 %v544_v21 }
 0x157   :  { %1116 = vmatpush3.msra.mxu1 %v544_v21  ;;  %v720_v21 = vld [vmem:[#allocation14 + $0x68] sm:$0xff] }
 0x158   :  { %1117 = vmatprep.subr.mxu1 %v543_v23 }
 0x159   :  { %1118 = vmatpush3.msra.mxu1 %v543_v23  ;;  %v718_v23 = vld [vmem:[#allocation14 + $0x58] sm:$0xff] }
 0x15a   :  { %1119 = vmatprep.subr.mxu1 %v542_v25 }
 0x15b   :  { %1120 = vmatpush3.msra.mxu1 %v542_v25  ;;  %v716_v25 = vld [vmem:[#allocation14 + $0x48] sm:$0xff] }
 0x15c   :  { %1121 = vmatprep.subr.mxu1 %v541_v26 }
 0x15d   :  { %1122 = vmatpush3.msra.mxu1 %v541_v26  ;;  %v714_v26 = vld [vmem:[#allocation14 + $0x38] sm:$0xff] }
 0x15e   :  { %1123 = vmatprep.subr.mxu1 %v540_v28 }
 0x15f   :  { %1124 = vmatpush3.msra.mxu1 %v540_v28  ;;  %v712_v28 = vld [vmem:[#allocation14 + $0x28] sm:$0xff] }
 0x160   :  { %1125 = vmatprep.subr.mxu1 %v539_v31 }
 0x161   :  { %1126 = vmatpush3.msra.mxu1 %v539_v31  ;;  %v710_v31 = vld [vmem:[#allocation14 + $0x18] sm:$0xff] }
 0x162   :  { %1127 = vmatprep.subr.mxu1 %v538_v33 }
 0x163   :  { %1128 = vmatpush3.msra.mxu1 %v538_v33  ;;  %v708_v33 = vld [vmem:[#allocation14 + $0x8] sm:$0xff] }
 0x164   :  { %1129 = vmatprep.subr.mxu1 %v537_v35 }
 0x165   :  { %1130 = vmatpush3.msra.mxu1 %v537_v35  ;;  %v822_v35 = vld [vmem:[#allocation16 + $0x78] sm:$0xff] }
 0x166   :  { %1131 = vmatprep.subr.mxu1 %v536_v37 }
 0x167   :  { %1132 = vmatpush3.msra.mxu1 %v536_v37  ;;  %v820_v37 = vld [vmem:[#allocation16 + $0x68] sm:$0xff] }
 0x168   :  { %1133 = vmatprep.subr.mxu1 %v535_v39 }
 0x169   :  { %1134 = vmatpush3.msra.mxu1 %v535_v39  ;;  %v818_v39 = vld [vmem:[#allocation16 + $0x58] sm:$0xff] }
 0x16a   :  { %1135 = vmatprep.subr.mxu1 %v534_v41 }
 0x16b   :  { %1136 = vmatpush3.msra.mxu1 %v534_v41  ;;  %v816_v41 = vld [vmem:[#allocation16 + $0x48] sm:$0xff] }
 0x16c   :  { %1137 = vmatprep.subr.mxu1 %v533_v43 }
 0x16d   :  { %1138 = vmatpush3.msra.mxu1 %v533_v43  ;;  %v814_v43 = vld [vmem:[#allocation16 + $0x38] sm:$0xff] }
 0x16e   :  { %1139 = vmatprep.subr.mxu1 %v532_v45 }
 0x16f   :  { %1140 = vmatpush3.msra.mxu1 %v532_v45  ;;  %v812_v45 = vld [vmem:[#allocation16 + $0x28] sm:$0xff] }
 0x170   :  { %1141 = vmatprep.subr.mxu1 %v531_v47 }
 0x171   :  { %1142 = vmatpush3.msra.mxu1 %v531_v47 }
 0x172   :  { %1143 = vmatprep.subr.mxu1 %v530_v49 }
 0x173   :  { %1144 = vmatpush3.msra.mxu1 %v530_v49 }
 0x174   :  { %1183 = vmatprep.subr.mxu1 %v722_v50 }
 0x214   :  { %v1112_v11 = vpop.f32.mrf.mxu1 }
 0x215   :  { %v370_v15 = vadd.f32 %v1112_v11, %v931_v12 }
 0x216   :  { %v364_v13 = vpop.f32.mrf.mxu1 }
 0x217   :  { %v365_v14 = vadd.f32 %v931_v12, %v364_v13  ;;  %v374_v17 = vmax.f32 %v370_v15, 0.0 }
 0x219   :  { %v373_v16 = vmax.f32 %v365_v14, 0.0 }
 0x21b   :  { %484 = vmatmul.mubr.f32.vlgmr.msra.gmra.mxu0 %v373_v16 }
 0x21c   :  { %489 = vmatprep.mubr.f32.mxu0 %v1505_v10  ;;  %1149 = vmatpush3.msra.mxu0 %v529_v18  ;;  %v505_v10 = vld [vmem:[#allocation5 + $0x8] sm:$0xff] }
 0x21d   :  { %1150 = vmatprep.subr.mxu0 %v528_v20 }
 0x21e   :  { %1151 = vmatpush3.msra.mxu0 %v528_v20  ;;  %v721_v20 = vld [vmem:[#allocation14 + $0x70] sm:$0xff] }
 0x21f   :  { %490 = vmatmul.mubr.f32.gmra.mxu0 %v374_v17  ;;  %1152 = vmatprep.subr.mxu0 %v527_v22 }
 0x220   :  { %1180 = vmatprep.mubr.f32.mxu0 %v1638_v4  ;;  %1153 = vmatpush3.msra.mxu0 %v527_v22  ;;  %v525_v4 = vld [vmem:[#allocation11 + $0x58] sm:$0xff]  ;;  %v719_v22 = vld [vmem:[#allocation14 + $0x60] sm:$0xff] }
 0x221   :  { %1154 = vmatprep.subr.mxu0 %v526_v24 }
 0x222   :  { %1155 = vmatpush3.msra.mxu0 %v526_v24  ;;  %v717_v24 = vld [vmem:[#allocation14 + $0x50] sm:$0xff] }
 0x223   :  { %1156 = vmatprep.subr.mxu0 %v525_v4 }
 0x224   :  { %1157 = vmatpush3.msra.mxu0 %v525_v4  ;;  %v715_v4 = vld [vmem:[#allocation14 + $0x40] sm:$0xff] }
 0x225   :  { %1158 = vmatprep.subr.mxu0 %v524_v27 }
 0x226   :  { %1159 = vmatpush3.msra.mxu0 %v524_v27  ;;  %v713_v27 = vld [vmem:[#allocation14 + $0x30] sm:$0xff] }
 0x227   :  { %1160 = vmatprep.subr.mxu0 %v523_v30 }
 0x228   :  { %1161 = vmatpush3.msra.mxu0 %v523_v30  ;;  %v711_v30 = vld [vmem:[#allocation14 + $0x20] sm:$0xff] }
 0x229   :  { %1162 = vmatprep.subr.mxu0 %v522_v32 }
 0x22a   :  { %1163 = vmatpush3.msra.mxu0 %v522_v32  ;;  %v709_v32 = vld [vmem:[#allocation14 + $0x10] sm:$0xff] }
 0x22b   :  { %1164 = vmatprep.subr.mxu0 %v521_v34 }
 0x22c   :  { %1165 = vmatpush3.msra.mxu0 %v521_v34  ;;  %v707_v34 = vld [vmem:[#allocation14] sm:$0xff] }
 0x22d   :  { %1166 = vmatprep.subr.mxu0 %v520_v36 }
 0x22e   :  { %1167 = vmatpush3.msra.mxu0 %v520_v36  ;;  %v821_v36 = vld [vmem:[#allocation16 + $0x70] sm:$0xff] }
 0x22f   :  { %1168 = vmatprep.subr.mxu0 %v519_v38 }
 0x230   :  { %1169 = vmatpush3.msra.mxu0 %v519_v38  ;;  %v819_v38 = vld [vmem:[#allocation16 + $0x60] sm:$0xff] }
 0x231   :  { %1170 = vmatprep.subr.mxu0 %v518_v40 }
 0x232   :  { %1171 = vmatpush3.msra.mxu0 %v518_v40  ;;  %v817_v40 = vld [vmem:[#allocation16 + $0x50] sm:$0xff] }
 0x233   :  { %1172 = vmatprep.subr.mxu0 %v517_v42 }
 0x234   :  { %1173 = vmatpush3.msra.mxu0 %v517_v42  ;;  %v815_v42 = vld [vmem:[#allocation16 + $0x40] sm:$0xff] }
 0x235   :  { %1174 = vmatprep.subr.mxu0 %v516_v44 }
 0x236   :  { %1175 = vmatpush3.msra.mxu0 %v516_v44  ;;  %v813_v44 = vld [vmem:[#allocation16 + $0x30] sm:$0xff] }
 0x237   :  { %1176 = vmatprep.subr.mxu0 %v515_v46 }
 0x238   :  { %1177 = vmatpush3.msra.mxu0 %v515_v46  ;;  %v811_v46 = vld [vmem:[#allocation16 + $0x20] sm:$0xff] }
 0x239   :  { %1178 = vmatprep.subr.mxu0 %v514_v48 }
 0x23a   :  { %1179 = vmatpush3.msra.mxu0 %v514_v48 }
 0x23b   :  { %1181 = vmatmul.mubr.f32.vlgmr.msra.gmra.mxu0 %v1641_v29  ;;  %1218 = vmatprep.subr.mxu0 %v822_v35 }
 0x23c   :  { %1219 = vmatpush3.msra.mxu0 %v822_v35 }
 0x23d   :  { %1220 = vmatprep.subr.mxu0 %v821_v36 }
 0x23e   :  { %1221 = vmatpush3.msra.mxu0 %v821_v36 }
 0x23f   :  { %1222 = vmatprep.subr.mxu0 %v820_v37 }
 0x240   :  { %1223 = vmatpush3.msra.mxu0 %v820_v37 }
 0x241   :  { %1224 = vmatprep.subr.mxu0 %v819_v38 }
 0x242   :  { %1225 = vmatpush3.msra.mxu0 %v819_v38 }
 0x243   :  { %1226 = vmatprep.subr.mxu0 %v818_v39 }
 0x244   :  { %1227 = vmatpush3.msra.mxu0 %v818_v39 }
 0x245   :  { %1228 = vmatprep.subr.mxu0 %v817_v40 }
 0x246   :  { %1229 = vmatpush3.msra.mxu0 %v817_v40 }
 0x247   :  { %1230 = vmatprep.subr.mxu0 %v816_v41 }
 0x248   :  { %1231 = vmatpush3.msra.mxu0 %v816_v41 }
 0x249   :  { %1232 = vmatprep.subr.mxu0 %v815_v42 }
 0x24a   :  { %1233 = vmatpush3.msra.mxu0 %v815_v42 }
 0x24b   :  { %1234 = vmatprep.subr.mxu0 %v814_v43 }
 0x24c   :  { %1235 = vmatpush3.msra.mxu0 %v814_v43 }
 0x24d   :  { %1236 = vmatprep.subr.mxu0 %v813_v44 }
 0x24e   :  { %1237 = vmatpush3.msra.mxu0 %v813_v44 }
 0x24f   :  { %1238 = vmatprep.subr.mxu0 %v812_v45 }
 0x250   :  { %1239 = vmatpush3.msra.mxu0 %v812_v45 }
 0x251   :  { %1240 = vmatprep.subr.mxu0 %v811_v46 }
 0x252   :  { %1241 = vmatpush3.msra.mxu0 %v811_v46 }
 0x2db   :  { %v485_v56 = vpop.f32.mrf.mxu0 }
 0x2dc   :  { %v486_v8 = vadd.f32 %v485_v56, %v412_v5 }
 0x2dd   :  { %v487_v57 = vpop.f32.mrf.mxu0 }
 0x2de   :  { %v488_v58 = vadd.f32 %v487_v57, %v416_v55 }
 0x2df   :  { %v491_v59 = vpop.f32.mrf.mxu0 }
 0x2e0   :  { %v496_v60 = vmax.f32 %v488_v58, -10.0  ;;  %v492_v13 = vadd.f32 %v491_v59, %v412_v5  ;;  %v810_v58 = vld [vmem:[#allocation16 + $0x18] sm:$0xff]  ;;  %v809_v59 = vld [vmem:[#allocation16 + $0x10] sm:$0xff]  ;;  %v934_v5 = vld [vmem:[%s1684_s14] ss:$0 sm:$0xff] }
 0x2e1   :  { %v493_v61 = vpop.f32.mrf.mxu0  ;;  %1242 = vmatprep.subr.mxu0 %v810_v58 }
 0x2e2   :  { %v498_v62 = vmin.f32 %v496_v60, 2.0  ;;  %v494_v63 = vadd.f32 %v493_v61, %v416_v55  ;;  %1243 = vmatpush3.msra.mxu0 %v810_v58  ;;  %v808_v60 = vld [vmem:[#allocation16 + $0x8] sm:$0xff]  ;;  %v807_v61 = vld [vmem:[#allocation16] sm:$0xff] }
 0x2e3   :  { %1244 = vmatprep.subr.mxu0 %v809_v59 }
 0x2e4   :  { %v500_v29 = vmul.f32 1.442695, %v498_v62  ;;  %v497_v0 = vmax.f32 %v494_v63, -10.0  ;;  %1245 = vmatpush3.msra.mxu0 %v809_v59  ;;  %v933_v62 = vld [vmem:[%s1682_s12] ss:$0 sm:$0xff]  ;;  %s914_s12 = sshll.u32 %s1506_s0, 4  ;;  %s915_s12 = int_to_ptr.vmem [resolvable:$true] %s914_s12 }
 0x2e5   :  { %1246 = vmatprep.subr.mxu0 %v808_v60  ;;  %s1460_s20 = scalar_lea.vmem %s915_s12, 256  ;;  %p1465_p4 = scmp.lt.s32.totalorder %s915_s12, %s915_s12 }
 0x2e6   :  { %1268 = vpow2.f32 %v500_v29  ;;  %v499_v1 = vmin.f32 %v497_v0, 2.0  ;;  %1247 = vmatpush3.msra.mxu0 %v808_v60  ;;  %p1461_p3 = scmp.ne.s32.totalorder %s915_s12, %s1460_s20  ;;  %p1466_p5 = scmp.lt.s32.totalorder %s1460_s20, %s1460_s20 }
 0x2e7   :  { %1248 = vmatprep.subr.mxu0 %v807_v61 }
 0x2e8   :  { %v502_v2 = vmul.f32 1.442695, %v499_v1  ;;  %1249 = vmatpush3.msra.mxu0 %v807_v61  ;;  %p1467_p6 = por %p1466_p5, %p1465_p4 }
 0x2ea   :  { %1270 = vpow2.f32 %v502_v2  ;;  %p1468_p7 = pnand %p1467_p6, %p1461_p3 }
 0x2f3   :  { %v1269_v7 = vpop.eup %1268 }
 0x2f4   :  { %v506_v9 = vmul.f32 %v1269_v7, %v504_v6 }
 0x2f6   :  { %v508_v11 = vadd.f32 %v506_v9, %v486_v8 }
 0x2f7   :  { %v1271_v12 = vpop.eup %1270 }
 0x2f8   :  { %1272 = vtanh.f32 %v508_v11  ;;  %v507_v14 = vmul.f32 %v1271_v12, %v505_v10 }
 0x2fa   :  { %v509_v15 = vadd.f32 %v507_v14, %v492_v13 }
 0x2fb   :  { %v1182_v47 = vpop.f32.mrf.mxu0 }
 0x2fc   :  { %1274 = vtanh.f32 %v509_v15 }
 0x2fd   :  { %v687_v51 = vpop.f32.mrf.mxu0 }
 0x305   :  { %v1273_v16 = vpop.eup %1272 }
 0x306   :  { %v512_v17 = vmul.f32 0.25, %v1273_v16 }
 0x308   :  { %1145 = vmatprep.mubr.f32.mxu1 %v512_v17 }
 0x309   :  { %v1275_v18 = vpop.eup %1274 }
 0x30a   :  { %v513_v19 = vmul.f32 0.25, %v1275_v18 }
 0x30c   :  { %1146 = vmatmul.mubr.f32.vlgmr.msra.gmra.mxu1 %v513_v19 }
 0x30d   :  { %1184 = vmatpush3.msra.mxu1 %v722_v50  ;;  %v932_v50 = vld [vmem:[%s1680_s10] ss:$0 sm:$0xff] }
 0x30e   :  { %1185 = vmatprep.subr.mxu1 %v721_v20 }
 0x30f   :  { %1186 = vmatpush3.msra.mxu1 %v721_v20 }
 0x310   :  { %1187 = vmatprep.subr.mxu1 %v720_v21 }
 0x311   :  { %1188 = vmatpush3.msra.mxu1 %v720_v21 }
 0x312   :  { %1189 = vmatprep.subr.mxu1 %v719_v22 }
 0x313   :  { %1190 = vmatpush3.msra.mxu1 %v719_v22 }
 0x314   :  { %1191 = vmatprep.subr.mxu1 %v718_v23 }
 0x315   :  { %1192 = vmatpush3.msra.mxu1 %v718_v23 }
 0x316   :  { %1193 = vmatprep.subr.mxu1 %v717_v24 }
 0x317   :  { %1194 = vmatpush3.msra.mxu1 %v717_v24 }
 0x318   :  { %1195 = vmatprep.subr.mxu1 %v716_v25 }
 0x319   :  { %1196 = vmatpush3.msra.mxu1 %v716_v25 }
 0x31a   :  { %1197 = vmatprep.subr.mxu1 %v715_v4 }
 0x31b   :  { %1198 = vmatpush3.msra.mxu1 %v715_v4 }
 0x31c   :  { %1199 = vmatprep.subr.mxu1 %v714_v26 }
 0x31d   :  { %1200 = vmatpush3.msra.mxu1 %v714_v26 }
 0x31e   :  { %1201 = vmatprep.subr.mxu1 %v713_v27 }
 0x31f   :  { %1202 = vmatpush3.msra.mxu1 %v713_v27 }
 0x320   :  { %1203 = vmatprep.subr.mxu1 %v712_v28 }
 0x321   :  { %1204 = vmatpush3.msra.mxu1 %v712_v28 }
 0x322   :  { %1205 = vmatprep.subr.mxu1 %v711_v30 }
 0x323   :  { %1206 = vmatpush3.msra.mxu1 %v711_v30 }
 0x324   :  { %1207 = vmatprep.subr.mxu1 %v710_v31 }
 0x325   :  { %1208 = vmatpush3.msra.mxu1 %v710_v31 }
 0x326   :  { %1209 = vmatprep.subr.mxu1 %v709_v32 }
 0x327   :  { %1210 = vmatpush3.msra.mxu1 %v709_v32 }
 0x328   :  { %1211 = vmatprep.subr.mxu1 %v708_v33 }
 0x329   :  { %1212 = vmatpush3.msra.mxu1 %v708_v33 }
 0x32a   :  { %1213 = vmatprep.subr.mxu1 %v707_v34 }
 0x32b   :  { %1214 = vmatpush3.msra.mxu1 %v707_v34 }
 0x3cc   :  { %v1147_v48 = vpop.f32.mrf.mxu1 }
 0x3cd   :  { %v693_v49 = vadd.f32 %v1182_v47, %v1147_v48 }
 0x3ce   :  { %v612_v52 = vpop.f32.mrf.mxu1 }
 0x3cf   :  { %v688_v53 = vadd.f32 %v687_v51, %v612_v52  ;;  %v704_v54 = vadd.f32 %v932_v50, %v693_v49 }
 0x3d1   :  { %v703_v55 = vadd.f32 %v932_v50, %v688_v53  ;;  %v706_v57 = vmax.f32 %v704_v54, 0.0 }
 0x3d3   :  { %v705_v56 = vmax.f32 %v703_v55, 0.0 }
 0x3d5   :  { %1215 = vmatprep.mubr.f32.mxu1 %v705_v56 }
 0x3d6   :  { %1216 = vmatmul.mubr.f32.vlgmr.msra.gmra.mxu1 %v706_v57 }
 0x496   :  { %v1217_v63 = vpop.f32.mrf.mxu1 }
 0x497   :  { %v802_v29 = vadd.f32 %v1217_v63, %v933_v62 }
 0x498   :  { %v796_v0 = vpop.f32.mrf.mxu1 }
 0x499   :  { %v797_v1 = vadd.f32 %v933_v62, %v796_v0  ;;  %v806_v3 = vmax.f32 %v802_v29, 0.0 }
 0x49b   :  { %v805_v2 = vmax.f32 %v797_v1, 0.0 }
 0x49d   :  { %1250 = vmatprep.mubr.f32.mxu0 %v805_v2 }
 0x49e   :  { %1251 = vmatmul.mubr.f32.vlgmr.msra.gmra.mxu0 %v806_v3 }
 0x55e   :  { %v1252_v6 = vpop.f32.mrf.mxu0 }
 0x55f   :  { %v902_v7 = vadd.f32 %v1252_v6, %v934_v5 }
 0x560   :  { %v896_v8 = vpop.f32.mrf.mxu0 }
 0x561   :  { %1276 = vtanh.f32 %v902_v7  ;;  %v897_v9 = vadd.f32 %v934_v5, %v896_v8 }
 0x563   :  { %1278 = vtanh.f32 %v897_v9 }
 0x56e   :  { %v1277_v10 = vpop.eup %1276 }
 0x56f   :  { %908 = vst [vmem:[#allocation17 + $0x8] sm:$0xff] %v1277_v10 }
 0x570   :  { %v1279_v11 = vpop.eup %1278 }
 0x571   :  { %907 = vst [vmem:[#allocation17] sm:$0xff] %v1279_v11 }
 0x572   :  { %1471 = shalt.err (!%p1468_p7)
}
 0x573   :  { %920 = dma.vmem_to_hbm [thread:$0]  %s915_s12, 256, %s1685_s15, [#allocation4], %s1494_s23, %s1494_s23, %s1495_s24  }
 0x574   :  { %1490 = dma.done.wait [#allocation4], 256  }
 0x575   :  { %1491 = vsyncadd [#allocation4], 4294967040 }
 0x576   :  { %924 = vsyncpa [#allocation3], 1 }
 0x577   :  { %925 = vsyncpa [#allocation6], 1 }
 0x578   :  { %926 = vsyncpa [#allocation9], 1 }
 0x579   :  { %927 = vsyncpa [#allocation12], 1 }
 0x57a   :  { %928 = vsyncpa [#allocation15], 1 }
 0x57b   :  { %929 = vsyncpa [#allocation4], 1 }

</bundles_post_ra>
